<compile_context>
chip_gen: v5e
topology: v5e:2x2
jax: 0.10.0
libtpu: 0.0.40
codegen_flags: <defaults>
</compile_context>

<pallas_src>
import jax
import jax.numpy as jnp
from jax.experimental import pallas as pl
from jax.experimental.pallas import tpu as pltpu

NUM_CLASSES = 10
LAMBDA_COORD = 5.0   # lambda_box
LAMBDA_OBJ = 1.0
LAMBDA_CLS = 1.0
IOU_EPS = 1e-7
LOG_EPS = 1e-8


def _softplus(x):
    # numerically stable softplus;  BCEWithLogits(x, t) = softplus(x) - x*t
    return jnp.maximum(x, 0.0) + jnp.log1p(jnp.exp(-jnp.abs(x)))


def _sigmoid(x):
    return 1.0 / (1.0 + jnp.exp(-x))


# ---------------------------------------------------------------------------
# Kernel 1: per-image pairwise IoU (M_pad, N) and SimOTA cost matrix (M_pad, N)
# Layout: gt along sublanes, anchors (N) along lanes -> lane-dense math/stores.
# ---------------------------------------------------------------------------
def _cost_kernel(pred_ref, gt_ref, iou_ref, cost_ref):
    pred = pred_ref[0]                 # (5+C, N)   transposed predictions
    gt = gt_ref[0]                     # (M_pad, 5+C)  [box(4), valid, onehot(C)]

    px1 = pred[0:1, :]                 # (1, N)
    py1 = pred[1:2, :]
    px2 = pred[2:3, :]
    py2 = pred[3:4, :]
    cls_logits = pred[5:, :]           # (C, N)

    gx1 = gt[:, 0:1]                   # (M, 1)
    gy1 = gt[:, 1:2]
    gx2 = gt[:, 2:3]
    gy2 = gt[:, 3:4]
    valid = gt[:, 4:5]                 # (M, 1)
    gt_oh = gt[:, 5:]                  # (M, C)

    ix1 = jnp.maximum(px1, gx1)        # (M, N)
    iy1 = jnp.maximum(py1, gy1)
    ix2 = jnp.minimum(px2, gx2)
    iy2 = jnp.minimum(py2, gy2)
    inter = jnp.maximum(ix2 - ix1, 0.0) * jnp.maximum(iy2 - iy1, 0.0)    # (M, N)
    area_p = jnp.maximum(px2 - px1, 0.0) * jnp.maximum(py2 - py1, 0.0)   # (1, N)
    area_g = jnp.maximum(gx2 - gx1, 0.0) * jnp.maximum(gy2 - gy1, 0.0)   # (M, 1)
    iou = inter / (area_p + area_g - inter + IOU_EPS)                    # (M, N)

    # Exact pairwise BCE-with-logits classification cost (no sigmoid/log/eps):
    #   cost[m, n] = sum_c softplus(x[c,n]) - sum_c onehot[m,c] * x[c,n]
    sp_sum = jnp.sum(_softplus(cls_logits), axis=0, keepdims=True)       # (1, N)
    cls_cost = sp_sum - jnp.dot(gt_oh, cls_logits,
                                preferred_element_type=jnp.float32)      # (M, N)

    iou_cost = -jnp.log(iou + LOG_EPS)
    cost = cls_cost + 3.0 * iou_cost + (1.0 - valid) * 1e8

    iou_ref[0] = iou
    cost_ref[0] = cost


def _compute_cost_iou(pred_t, gt_packed):
    B, D, N = pred_t.shape
    M_pad, G = gt_packed.shape[1], gt_packed.shape[2]
    grid_spec = pltpu.PrefetchScalarGridSpec(
        num_scalar_prefetch=0, grid=(B,),
        in_specs=[
            pl.BlockSpec((1, D, N), lambda b: (b, 0, 0)),
            pl.BlockSpec((1, M_pad, G), lambda b: (b, 0, 0)),
        ],
        out_specs=[
            pl.BlockSpec((1, M_pad, N), lambda b: (b, 0, 0)),
            pl.BlockSpec((1, M_pad, N), lambda b: (b, 0, 0)),
        ])
    # NOTE: at production sizes (N ~ 6400-8400) each grid step is a few MB of
    # work; on v7x (64 MiB VMEM) tile N in 1024-lane blocks if M_pad grows.
    return pl.pallas_call(
        _cost_kernel,
        out_shape=(jax.ShapeDtypeStruct((B, M_pad, N), jnp.float32),
                   jax.ShapeDtypeStruct((B, M_pad, N), jnp.float32)),
        grid_spec=grid_spec,
        compiler_params=pltpu.CompilerParams(
            dimension_semantics=("parallel",)),
    )(pred_t, gt_packed)


# ---------------------------------------------------------------------------
# Kernel 2: per-image masked loss reductions, transposed/lane-dense operands.
# target_t packs [assigned boxes(4), fg mask(1), assigned onehot(C)] -> (D, N).
# Output: one (1,1,8) row per image: [box_loss, obj_loss, cls_loss, 0...].
# ---------------------------------------------------------------------------
def _loss_kernel(pred_ref, tgt_ref, out_ref):
    pred = pred_ref[0]                 # (5+C, N)
    tgt = tgt_ref[0]                   # (5+C, N)

    pboxes = pred[0:4, :]              # (4, N)
    obj_logit = pred[4:5, :]           # (1, N)
    cls_logit = pred[5:, :]            # (C, N)
    gboxes = tgt[0:4, :]               # (4, N)
    fg = tgt[4:5, :]                   # (1, N)  foreground mask {0,1}
    gt_oh = tgt[5:, :]                 # (C, N)

    n_anchors = float(obj_logit.shape[-1])
    n_cls = float(cls_logit.shape[0])

    n_fg = jnp.sum(fg)
    has_gt = n_fg > 0.0                # SimOTA gives >=1 fg anchor iff num_gt>0
    denom = jnp.maximum(n_fg, 1.0)

    # Smooth L1 (beta = 1, mean over fg anchors * 4 coords)
    d = jnp.abs(pboxes - gboxes)
    sl1 = jnp.where(d < 1.0, 0.5 * d * d, d - 0.5)
    box_loss = jnp.sum(sl1 * fg) / (denom * 4.0)
    box_loss = jnp.where(has_gt, box_loss, 0.0)

    # elementwise IoU targets (diag of bbox_iou(pred_fg, assigned_fg))
    ix1 = jnp.maximum(pboxes[0:1, :], gboxes[0:1, :])
    iy1 = jnp.maximum(pboxes[1:2, :], gboxes[1:2, :])
    ix2 = jnp.minimum(pboxes[2:3, :], gboxes[2:3, :])
    iy2 = jnp.minimum(pboxes[3:4, :], gboxes[3:4, :])
    inter = jnp.maximum(ix2 - ix1, 0.0) * jnp.maximum(iy2 - iy1, 0.0)
    area_p = (jnp.maximum(pboxes[2:3, :] - pboxes[0:1, :], 0.0) *
              jnp.maximum(pboxes[3:4, :] - pboxes[1:2, :], 0.0))
    area_g = (jnp.maximum(gboxes[2:3, :] - gboxes[0:1, :], 0.0) *
              jnp.maximum(gboxes[3:4, :] - gboxes[1:2, :], 0.0))
    iou_t = inter / (area_p + area_g - inter + IOU_EPS)      # (1, N)

    # objectness: the reference applies sigmoid THEN BCEWithLogits
    # (obj_pred_fg = sigmoid(obj); bce(obj_pred_fg, iou_targets)) — reproduced.
    s_obj = _sigmoid(obj_logit)
    bce_fg = _softplus(s_obj) - s_obj * iou_t
    obj_fg = jnp.sum(bce_fg * fg) / denom
    bce_empty = _softplus(obj_logit)                         # BCEWithLogits(x, 0)
    obj_empty = jnp.sum(bce_empty) / n_anchors
    obj_loss = jnp.where(has_gt, obj_fg, obj_empty)

    # classification BCE-with-logits vs one-hot targets (mean over fg * C)
    bce_cls = _softplus(cls_logit) - cls_logit * gt_oh
    cls_loss = jnp.sum(bce_cls * fg) / (denom * n_cls)
    cls_loss = jnp.where(has_gt, cls_loss, 0.0)

    lane = jax.lax.broadcasted_iota(jnp.int32, (1, 1, 8), 2)
    out_ref[...] = (jnp.where(lane == 0, box_loss, 0.0)
                    + jnp.where(lane == 1, obj_loss, 0.0)
                    + jnp.where(lane == 2, cls_loss, 0.0))


def _per_image_losses(pred_t, target_t):
    B, D, N = pred_t.shape
    grid_spec = pltpu.PrefetchScalarGridSpec(
        num_scalar_prefetch=0, grid=(B,),
        in_specs=[
            pl.BlockSpec((1, D, N), lambda b: (b, 0, 0)),
            pl.BlockSpec((1, D, N), lambda b: (b, 0, 0)),
        ],
        out_specs=pl.BlockSpec((1, 1, 8), lambda b: (b, 0, 0)))
    return pl.pallas_call(
        _loss_kernel,
        out_shape=jax.ShapeDtypeStruct((B, 1, 8), jnp.float32),
        grid_spec=grid_spec,
        compiler_params=pltpu.CompilerParams(
            dimension_semantics=("parallel",)),
    )(pred_t, target_t)


# ---------------------------------------------------------------------------
# SimOTA assignment glue (dynamic-k selection; plain JAX, vmapped over batch)
# cost/ious are (M_pad, N); valid is (M_pad,)
# ---------------------------------------------------------------------------
def _simota_matching_single(cost, ious, valid):
    # TODO(synk): simota_matching is not defined in the reference file; this is
    # a standard YOLOX-style SimOTA (dynamic-k from top-10 IoUs, min-cost
    # conflict resolution).
    M, N = cost.shape
    k_cand = min(10, N)
    topk_ious, _ = jax.lax.top_k(ious, k_cand)                        # (M, k)
    dynamic_k = jnp.clip(jnp.sum(topk_ious, axis=-1).astype(jnp.int32), 1, N)
    sorted_cost = jnp.sort(cost, axis=-1)                             # (M, N)
    thresh = jnp.take_along_axis(sorted_cost, (dynamic_k - 1)[:, None], axis=-1)
    valid_b = valid > 0.5
    matching = (cost <= thresh) & valid_b[:, None]                    # (M, N)
    # anchors matched to multiple gts -> keep the min-cost gt only
    multi = jnp.sum(matching, axis=0) > 1                             # (N,)
    masked_cost = jnp.where(valid_b[:, None], cost, jnp.inf)
    best_gt = jnp.argmin(masked_cost, axis=0)                         # (N,)
    best_oh = jax.nn.one_hot(best_gt, M, dtype=jnp.bool_, axis=0)     # (M, N)
    matching = jnp.where(multi[None, :], best_oh, matching)
    fg_mask = jnp.any(matching, axis=0)                               # (N,)
    matched_gt_inds = jnp.argmax(matching, axis=0)                    # (N,)
    return matched_gt_inds, fg_mask


# ---------------------------------------------------------------------------
# Full YOLOLoss forward
# ---------------------------------------------------------------------------
def yolo_loss(preds, gt_boxes, gt_labels, gt_valid):
    """
    preds:    (B, A, H, W, 5+C) float32 (only anchor 0 is used, as in reference)
    gt_boxes: (B, M, 4) float32 (xyxy), zero-padded
    gt_labels:(B, M) int32, zero-padded
    gt_valid: (B, M) float32 {0,1}  (replaces the variable-length Python list)
    """
    B, A, H, W, D = preds.shape
    C = D - 5
    N = H * W
    pred = preds[:, 0].reshape(B, N, D)
    pred_t = jnp.swapaxes(pred, 1, 2)                  # (B, D, N) lane-dense

    # pad gt count up to a sublane multiple
    M = gt_boxes.shape[1]
    M_pad = ((M + 7) // 8) * 8
    if M_pad != M:
        gt_boxes = jnp.pad(gt_boxes, ((0, 0), (0, M_pad - M), (0, 0)))
        gt_labels = jnp.pad(gt_labels, ((0, 0), (0, M_pad - M)))
        gt_valid = jnp.pad(gt_valid, ((0, 0), (0, M_pad - M)))

    gt_oh = jax.nn.one_hot(gt_labels, C, dtype=jnp.float32) * gt_valid[..., None]
    gt_packed = jnp.concatenate(
        [gt_boxes, gt_valid[..., None], gt_oh], axis=-1)   # (B, M_pad, 5+C)

    ious, cost = _compute_cost_iou(pred_t, gt_packed)      # each (B, M_pad, N)

    matched_gt_inds, fg_mask = jax.vmap(_simota_matching_single)(
        cost, ious, gt_valid)

    asg_boxes = jnp.take_along_axis(gt_boxes, matched_gt_inds[..., None], axis=1)
    asg_labels = jnp.take_along_axis(gt_labels, matched_gt_inds, axis=1)
    asg_oh = jax.nn.one_hot(asg_labels, C, dtype=jnp.float32)        # (B, N, C)
    fg = fg_mask.astype(jnp.float32)[:, None, :]                     # (B, 1, N)

    target_t = jnp.concatenate(
        [jnp.swapaxes(asg_boxes, 1, 2), fg, jnp.swapaxes(asg_oh, 1, 2)],
        axis=1)                                                      # (B, D, N)

    per_img = _per_image_losses(pred_t, target_t)                    # (B, 1, 8)
    box_loss = jnp.sum(per_img[:, 0, 0])
    obj_loss = jnp.sum(per_img[:, 0, 1])
    cls_loss = jnp.sum(per_img[:, 0, 2])
    total = (LAMBDA_COORD * box_loss + LAMBDA_OBJ * obj_loss
             + LAMBDA_CLS * cls_loss) / B
    return total, box_loss / B, obj_loss / B, cls_loss / B


if __name__ == "__main__":
    key = jax.random.PRNGKey(0)
    B, A, H, W, C = 2, 1, 8, 8, NUM_CLASSES
    M = 8
    k1, k2, k3, k4, k5, k6 = jax.random.split(key, 6)

    # predictions: first 4 channels as plausible xyxy boxes, rest ~N(0,1)
    cxcy = jax.random.uniform(k1, (B, A, H, W, 2), minval=0.2, maxval=0.8)
    wh = jax.random.uniform(k2, (B, A, H, W, 2), minval=0.05, maxval=0.3)
    box_xyxy = jnp.concatenate([cxcy - wh / 2.0, cxcy + wh / 2.0], axis=-1)
    rest = jax.random.normal(k3, (B, A, H, W, 1 + C))
    preds = jnp.concatenate([box_xyxy, rest], axis=-1).astype(jnp.float32)

    # padded ground truth: image 0 has 3 boxes, image 1 has none (empty branch)
    gcxcy = jax.random.uniform(k4, (B, M, 2), minval=0.2, maxval=0.8)
    gwh = jax.random.uniform(k5, (B, M, 2), minval=0.1, maxval=0.4)
    gt_boxes = jnp.concatenate([gcxcy - gwh / 2.0, gcxcy + gwh / 2.0],
                               axis=-1).astype(jnp.float32)
    gt_labels = jax.random.randint(k6, (B, M), 0, C).astype(jnp.int32)
    gt_counts = jnp.array([3, 0], dtype=jnp.int32)
    gt_valid = (jnp.arange(M)[None, :] < gt_counts[:, None]).astype(jnp.float32)
    gt_boxes = gt_boxes * gt_valid[..., None]
    gt_labels = gt_labels * gt_valid.astype(jnp.int32)

    total, box_l, obj_l, cls_l = jax.jit(yolo_loss)(
        preds, gt_boxes, gt_labels, gt_valid)
    jax.block_until_ready((total, box_l, obj_l, cls_l))
    print("KERNEL_OK")
</pallas_src>

<mosaic_0001>
module attributes {stable_mosaic.version = 11 : i64} {
  func.func @_cost_kernel(%arg0: i32, %arg1: memref<1x15x64xf32, #tpu.memory_space<vmem>>, %arg2: memref<1x8x15xf32, #tpu.memory_space<vmem>>, %arg3: memref<1x8x64xf32, #tpu.memory_space<vmem>>, %arg4: memref<1x8x64xf32, #tpu.memory_space<vmem>>) attributes {dimension_semantics = [#tpu.dimension_semantics<parallel>], iteration_bounds = array<i64: 2>, scalar_prefetch = 0 : i64, scratch_operands = 0 : i64, tpu.core_type = #tpu.core_type<tc>, window_params = [{transform_indices = @transform_0, window_bounds = array<i64: 1, 15, 64>}, {transform_indices = @transform_1, window_bounds = array<i64: 1, 8, 15>}, {transform_indices = @transform_2, window_bounds = array<i64: 1, 8, 64>}, {transform_indices = @transform_3, window_bounds = array<i64: 1, 8, 64>}]} {
    %c0 = arith.constant 0 : index
    %c0_0 = arith.constant 0 : index
    %c0_1 = arith.constant 0 : index
    %0 = vector.load %arg1[%c0, %c0_0, %c0_1] : memref<1x15x64xf32, #tpu.memory_space<vmem>>, vector<1x15x64xf32>
    %1 = vector.shape_cast %0 : vector<1x15x64xf32> to vector<15x64xf32>
    %c0_2 = arith.constant 0 : index
    %c0_3 = arith.constant 0 : index
    %c0_4 = arith.constant 0 : index
    %2 = vector.load %arg2[%c0_2, %c0_3, %c0_4] : memref<1x8x15xf32, #tpu.memory_space<vmem>>, vector<1x8x15xf32>
    %3 = vector.shape_cast %2 : vector<1x8x15xf32> to vector<8x15xf32>
    %4 = vector.extract_strided_slice %1 {offsets = [0, 0], sizes = [1, 64], strides = [1, 1]} : vector<15x64xf32> to vector<1x64xf32>
    %5 = vector.extract_strided_slice %1 {offsets = [1, 0], sizes = [1, 64], strides = [1, 1]} : vector<15x64xf32> to vector<1x64xf32>
    %6 = vector.extract_strided_slice %1 {offsets = [2, 0], sizes = [1, 64], strides = [1, 1]} : vector<15x64xf32> to vector<1x64xf32>
    %7 = vector.extract_strided_slice %1 {offsets = [3, 0], sizes = [1, 64], strides = [1, 1]} : vector<15x64xf32> to vector<1x64xf32>
    %8 = vector.extract_strided_slice %1 {offsets = [5, 0], sizes = [10, 64], strides = [1, 1]} : vector<15x64xf32> to vector<10x64xf32>
    %9 = vector.extract_strided_slice %3 {offsets = [0, 0], sizes = [8, 1], strides = [1, 1]} : vector<8x15xf32> to vector<8x1xf32>
    %10 = vector.extract_strided_slice %3 {offsets = [0, 1], sizes = [8, 1], strides = [1, 1]} : vector<8x15xf32> to vector<8x1xf32>
    %11 = vector.extract_strided_slice %3 {offsets = [0, 2], sizes = [8, 1], strides = [1, 1]} : vector<8x15xf32> to vector<8x1xf32>
    %12 = vector.extract_strided_slice %3 {offsets = [0, 3], sizes = [8, 1], strides = [1, 1]} : vector<8x15xf32> to vector<8x1xf32>
    %13 = vector.extract_strided_slice %3 {offsets = [0, 4], sizes = [8, 1], strides = [1, 1]} : vector<8x15xf32> to vector<8x1xf32>
    %14 = vector.extract_strided_slice %3 {offsets = [0, 5], sizes = [8, 10], strides = [1, 1]} : vector<8x15xf32> to vector<8x10xf32>
    %15 = vector.broadcast %4 : vector<1x64xf32> to vector<8x64xf32>
    %16 = vector.broadcast %9 : vector<8x1xf32> to vector<8x64xf32>
    %17 = arith.maximumf %15, %16 : vector<8x64xf32>
    %18 = vector.broadcast %5 : vector<1x64xf32> to vector<8x64xf32>
    %19 = vector.broadcast %10 : vector<8x1xf32> to vector<8x64xf32>
    %20 = arith.maximumf %18, %19 : vector<8x64xf32>
    %21 = vector.broadcast %6 : vector<1x64xf32> to vector<8x64xf32>
    %22 = vector.broadcast %11 : vector<8x1xf32> to vector<8x64xf32>
    %23 = arith.minimumf %21, %22 : vector<8x64xf32>
    %24 = vector.broadcast %7 : vector<1x64xf32> to vector<8x64xf32>
    %25 = vector.broadcast %12 : vector<8x1xf32> to vector<8x64xf32>
    %26 = arith.minimumf %24, %25 : vector<8x64xf32>
    %27 = arith.subf %23, %17 : vector<8x64xf32>
    %cst = arith.constant 0.000000e+00 : f32
    %28 = vector.broadcast %cst : f32 to vector<8x64xf32>
    %29 = arith.maximumf %27, %28 : vector<8x64xf32>
    %30 = arith.subf %26, %20 : vector<8x64xf32>
    %cst_5 = arith.constant 0.000000e+00 : f32
    %31 = vector.broadcast %cst_5 : f32 to vector<8x64xf32>
    %32 = arith.maximumf %30, %31 : vector<8x64xf32>
    %33 = arith.mulf %29, %32 : vector<8x64xf32>
    %34 = arith.subf %6, %4 : vector<1x64xf32>
    %cst_6 = arith.constant 0.000000e+00 : f32
    %35 = vector.broadcast %cst_6 : f32 to vector<1x64xf32>
    %36 = arith.maximumf %34, %35 : vector<1x64xf32>
    %37 = arith.subf %7, %5 : vector<1x64xf32>
    %cst_7 = arith.constant 0.000000e+00 : f32
    %38 = vector.broadcast %cst_7 : f32 to vector<1x64xf32>
    %39 = arith.maximumf %37, %38 : vector<1x64xf32>
    %40 = arith.mulf %36, %39 : vector<1x64xf32>
    %41 = arith.subf %11, %9 : vector<8x1xf32>
    %cst_8 = arith.constant 0.000000e+00 : f32
    %42 = vector.broadcast %cst_8 : f32 to vector<8x1xf32>
    %43 = arith.maximumf %41, %42 : vector<8x1xf32>
    %44 = arith.subf %12, %10 : vector<8x1xf32>
    %cst_9 = arith.constant 0.000000e+00 : f32
    %45 = vector.broadcast %cst_9 : f32 to vector<8x1xf32>
    %46 = arith.maximumf %44, %45 : vector<8x1xf32>
    %47 = arith.mulf %43, %46 : vector<8x1xf32>
    %48 = vector.broadcast %40 : vector<1x64xf32> to vector<8x64xf32>
    %49 = vector.broadcast %47 : vector<8x1xf32> to vector<8x64xf32>
    %50 = arith.addf %48, %49 : vector<8x64xf32>
    %51 = arith.subf %50, %33 : vector<8x64xf32>
    %cst_10 = arith.constant 1.000000e-07 : f32
    %52 = vector.broadcast %cst_10 : f32 to vector<8x64xf32>
    %53 = arith.addf %51, %52 : vector<8x64xf32>
    %54 = arith.divf %33, %53 : vector<8x64xf32>
    %cst_11 = arith.constant 0.000000e+00 : f32
    %55 = vector.broadcast %cst_11 : f32 to vector<10x64xf32>
    %56 = arith.maximumf %8, %55 : vector<10x64xf32>
    %57 = math.absf %8 : vector<10x64xf32>
    %cst_12 = arith.constant 0.000000e+00 : f32
    %58 = vector.broadcast %cst_12 : f32 to vector<10x64xf32>
    %59 = arith.subf %58, %57 : vector<10x64xf32>
    %60 = math.exp %59 : vector<10x64xf32>
    %61 = math.log1p %60 : vector<10x64xf32>
    %62 = arith.addf %56, %61 : vector<10x64xf32>
    %cst_13 = arith.constant dense<0.000000e+00> : vector<64xf32>
    %63 = vector.multi_reduction <add>, %62, %cst_13 [0] : vector<10x64xf32> to vector<64xf32>
    %64 = vector.shape_cast %63 : vector<64xf32> to vector<1x64xf32>
    %cst_14 = arith.constant dense<0.000000e+00> : vector<8x64xf32>
    %65 = tpu.matmul %14, %8, %cst_14 {dimension_numbers = #tpu.dot_dimension_numbers<[1], [0], [0], [1], [0, 0, 1, 1], [], []>} : vector<8x10xf32>, vector<10x64xf32>, vector<8x64xf32> -> vector<8x64xf32>
    %66 = vector.broadcast %64 : vector<1x64xf32> to vector<8x64xf32>
    %67 = arith.subf %66, %65 : vector<8x64xf32>
    %cst_15 = arith.constant 9.99999993E-9 : f32
    %68 = vector.broadcast %cst_15 : f32 to vector<8x64xf32>
    %69 = arith.addf %54, %68 : vector<8x64xf32>
    %70 = math.log %69 : vector<8x64xf32>
    %cst_16 = arith.constant 0.000000e+00 : f32
    %71 = vector.broadcast %cst_16 : f32 to vector<8x64xf32>
    %72 = arith.subf %71, %70 : vector<8x64xf32>
    %cst_17 = arith.constant 3.000000e+00 : f32
    %73 = vector.broadcast %cst_17 : f32 to vector<8x64xf32>
    %74 = arith.mulf %73, %72 : vector<8x64xf32>
    %75 = arith.addf %67, %74 : vector<8x64xf32>
    %cst_18 = arith.constant 1.000000e+00 : f32
    %76 = vector.broadcast %cst_18 : f32 to vector<8x1xf32>
    %77 = arith.subf %76, %13 : vector<8x1xf32>
    %cst_19 = arith.constant 1.000000e+08 : f32
    %78 = vector.broadcast %cst_19 : f32 to vector<8x1xf32>
    %79 = arith.mulf %77, %78 : vector<8x1xf32>
    %80 = vector.broadcast %79 : vector<8x1xf32> to vector<8x64xf32>
    %81 = arith.addf %75, %80 : vector<8x64xf32>
    %c0_20 = arith.constant 0 : index
    %c0_21 = arith.constant 0 : index
    %c0_22 = arith.constant 0 : index
    %82 = vector.load %arg3[%c0_20, %c0_21, %c0_22] : memref<1x8x64xf32, #tpu.memory_space<vmem>>, vector<1x8x64xf32>
    %83 = vector.shape_cast %82 : vector<1x8x64xf32> to vector<8x64xf32>
    %84 = vector.shape_cast %54 : vector<8x64xf32> to vector<1x8x64xf32>
    tpu.vector_store %arg3[%c0_20, %c0_21, %c0_22], %84 {strides = array<i32>} : memref<1x8x64xf32, #tpu.memory_space<vmem>>, vector<1x8x64xf32>,
    %c0_23 = arith.constant 0 : index
    %c0_24 = arith.constant 0 : index
    %c0_25 = arith.constant 0 : index
    %85 = vector.load %arg4[%c0_23, %c0_24, %c0_25] : memref<1x8x64xf32, #tpu.memory_space<vmem>>, vector<1x8x64xf32>
    %86 = vector.shape_cast %85 : vector<1x8x64xf32> to vector<8x64xf32>
    %87 = vector.shape_cast %81 : vector<8x64xf32> to vector<1x8x64xf32>
    tpu.vector_store %arg4[%c0_23, %c0_24, %c0_25], %87 {strides = array<i32>} : memref<1x8x64xf32, #tpu.memory_space<vmem>>, vector<1x8x64xf32>,
    return
  }
  func.func @transform_0(%arg0: i32) -> (i32, i32, i32) {
    %c0_i32 = arith.constant 0 : i32
    %c0_i32_0 = arith.constant 0 : i32
    %c0_i32_1 = arith.constant 0 : i32
    return %arg0, %c0_i32, %c0_i32_0 : i32, i32, i32
  }
  func.func @transform_1(%arg0: i32) -> (i32, i32, i32) {
    %c0_i32 = arith.constant 0 : i32
    %c0_i32_0 = arith.constant 0 : i32
    %c0_i32_1 = arith.constant 0 : i32
    return %arg0, %c0_i32, %c0_i32_0 : i32, i32, i32
  }
  func.func @transform_2(%arg0: i32) -> (i32, i32, i32) {
    %c0_i32 = arith.constant 0 : i32
    %c0_i32_0 = arith.constant 0 : i32
    %c0_i32_1 = arith.constant 0 : i32
    return %arg0, %c0_i32, %c0_i32_0 : i32, i32, i32
  }
  func.func @transform_3(%arg0: i32) -> (i32, i32, i32) {
    %c0_i32 = arith.constant 0 : i32
    %c0_i32_0 = arith.constant 0 : i32
    %c0_i32_1 = arith.constant 0 : i32
    return %arg0, %c0_i32, %c0_i32_0 : i32, i32, i32
  }
}

module attributes {stable_mosaic.version = 11 : i64} {
  func.func @_loss_kernel(%arg0: i32, %arg1: memref<1x15x64xf32, #tpu.memory_space<vmem>>, %arg2: memref<1x15x64xf32, #tpu.memory_space<vmem>>, %arg3: memref<1x1x8xf32, #tpu.memory_space<vmem>>) attributes {dimension_semantics = [#tpu.dimension_semantics<parallel>], iteration_bounds = array<i64: 2>, scalar_prefetch = 0 : i64, scratch_operands = 0 : i64, tpu.core_type = #tpu.core_type<tc>, window_params = [{transform_indices = @transform_0, window_bounds = array<i64: 1, 15, 64>}, {transform_indices = @transform_1, window_bounds = array<i64: 1, 15, 64>}, {transform_indices = @transform_2, window_bounds = array<i64: 1, 1, 8>}]} {
    %c0 = arith.constant 0 : index
    %c0_0 = arith.constant 0 : index
    %c0_1 = arith.constant 0 : index
    %0 = vector.load %arg1[%c0, %c0_0, %c0_1] : memref<1x15x64xf32, #tpu.memory_space<vmem>>, vector<1x15x64xf32>
    %1 = vector.shape_cast %0 : vector<1x15x64xf32> to vector<15x64xf32>
    %c0_2 = arith.constant 0 : index
    %c0_3 = arith.constant 0 : index
    %c0_4 = arith.constant 0 : index
    %2 = vector.load %arg2[%c0_2, %c0_3, %c0_4] : memref<1x15x64xf32, #tpu.memory_space<vmem>>, vector<1x15x64xf32>
    %3 = vector.shape_cast %2 : vector<1x15x64xf32> to vector<15x64xf32>
    %4 = vector.extract_strided_slice %1 {offsets = [0, 0], sizes = [4, 64], strides = [1, 1]} : vector<15x64xf32> to vector<4x64xf32>
    %5 = vector.extract_strided_slice %1 {offsets = [4, 0], sizes = [1, 64], strides = [1, 1]} : vector<15x64xf32> to vector<1x64xf32>
    %6 = vector.extract_strided_slice %1 {offsets = [5, 0], sizes = [10, 64], strides = [1, 1]} : vector<15x64xf32> to vector<10x64xf32>
    %7 = vector.extract_strided_slice %3 {offsets = [0, 0], sizes = [4, 64], strides = [1, 1]} : vector<15x64xf32> to vector<4x64xf32>
    %8 = vector.extract_strided_slice %3 {offsets = [4, 0], sizes = [1, 64], strides = [1, 1]} : vector<15x64xf32> to vector<1x64xf32>
    %9 = vector.extract_strided_slice %3 {offsets = [5, 0], sizes = [10, 64], strides = [1, 1]} : vector<15x64xf32> to vector<10x64xf32>
    %10 = vector.shape_cast %8 : vector<1x64xf32> to vector<1x1x64xf32>
    %cst = arith.constant dense<0.000000e+00> : vector<1xf32>
    %11 = vector.multi_reduction <add>, %10, %cst [1, 2] : vector<1x1x64xf32> to vector<1xf32>
    %12 = vector.shape_cast %11 : vector<1xf32> to vector<1x1x1xf32>
    %13 = vector.extract %12[0, 0, 0] : f32 from vector<1x1x1xf32>
    %cst_5 = arith.constant 0.000000e+00 : f32
    %14 = arith.cmpf ogt, %13, %cst_5 : f32
    %cst_6 = arith.constant 1.000000e+00 : f32
    %15 = arith.maximumf %13, %cst_6 : f32
    %16 = arith.subf %4, %7 : vector<4x64xf32>
    %17 = math.absf %16 : vector<4x64xf32>
    %cst_7 = arith.constant 1.000000e+00 : f32
    %18 = vector.broadcast %cst_7 : f32 to vector<4x64xf32>
    %19 = arith.cmpf olt, %17, %18 : vector<4x64xf32>
    %cst_8 = arith.constant 5.000000e-01 : f32
    %20 = vector.broadcast %cst_8 : f32 to vector<4x64xf32>
    %21 = arith.mulf %20, %17 : vector<4x64xf32>
    %22 = arith.mulf %21, %17 : vector<4x64xf32>
    %cst_9 = arith.constant 5.000000e-01 : f32
    %23 = vector.broadcast %cst_9 : f32 to vector<4x64xf32>
    %24 = arith.subf %17, %23 : vector<4x64xf32>
    %25 = arith.select %19, %22, %24 : vector<4x64xi1>, vector<4x64xf32>
    %26 = vector.broadcast %8 : vector<1x64xf32> to vector<4x64xf32>
    %27 = arith.mulf %25, %26 : vector<4x64xf32>
    %28 = vector.shape_cast %27 : vector<4x64xf32> to vector<1x4x64xf32>
    %cst_10 = arith.constant dense<0.000000e+00> : vector<1xf32>
    %29 = vector.multi_reduction <add>, %28, %cst_10 [1, 2] : vector<1x4x64xf32> to vector<1xf32>
    %30 = vector.shape_cast %29 : vector<1xf32> to vector<1x1x1xf32>
    %31 = vector.extract %30[0, 0, 0] : f32 from vector<1x1x1xf32>
    %cst_11 = arith.constant 4.000000e+00 : f32
    %32 = arith.mulf %15, %cst_11 : f32
    %33 = arith.divf %31, %32 : f32
    %cst_12 = arith.constant 0.000000e+00 : f32
    %34 = arith.select %14, %33, %cst_12 : f32
    %35 = vector.extract_strided_slice %4 {offsets = [0, 0], sizes = [1, 64], strides = [1, 1]} : vector<4x64xf32> to vector<1x64xf32>
    %36 = vector.extract_strided_slice %7 {offsets = [0, 0], sizes = [1, 64], strides = [1, 1]} : vector<4x64xf32> to vector<1x64xf32>
    %37 = arith.maximumf %35, %36 : vector<1x64xf32>
    %38 = vector.extract_strided_slice %4 {offsets = [1, 0], sizes = [1, 64], strides = [1, 1]} : vector<4x64xf32> to vector<1x64xf32>
    %39 = vector.extract_strided_slice %7 {offsets = [1, 0], sizes = [1, 64], strides = [1, 1]} : vector<4x64xf32> to vector<1x64xf32>
    %40 = arith.maximumf %38, %39 : vector<1x64xf32>
    %41 = vector.extract_strided_slice %4 {offsets = [2, 0], sizes = [1, 64], strides = [1, 1]} : vector<4x64xf32> to vector<1x64xf32>
    %42 = vector.extract_strided_slice %7 {offsets = [2, 0], sizes = [1, 64], strides = [1, 1]} : vector<4x64xf32> to vector<1x64xf32>
    %43 = arith.minimumf %41, %42 : vector<1x64xf32>
    %44 = vector.extract_strided_slice %4 {offsets = [3, 0], sizes = [1, 64], strides = [1, 1]} : vector<4x64xf32> to vector<1x64xf32>
    %45 = vector.extract_strided_slice %7 {offsets = [3, 0], sizes = [1, 64], strides = [1, 1]} : vector<4x64xf32> to vector<1x64xf32>
    %46 = arith.minimumf %44, %45 : vector<1x64xf32>
    %47 = arith.subf %43, %37 : vector<1x64xf32>
    %cst_13 = arith.constant 0.000000e+00 : f32
    %48 = vector.broadcast %cst_13 : f32 to vector<1x64xf32>
    %49 = arith.maximumf %47, %48 : vector<1x64xf32>
    %50 = arith.subf %46, %40 : vector<1x64xf32>
    %cst_14 = arith.constant 0.000000e+00 : f32
    %51 = vector.broadcast %cst_14 : f32 to vector<1x64xf32>
    %52 = arith.maximumf %50, %51 : vector<1x64xf32>
    %53 = arith.mulf %49, %52 : vector<1x64xf32>
    %54 = vector.extract_strided_slice %4 {offsets = [2, 0], sizes = [1, 64], strides = [1, 1]} : vector<4x64xf32> to vector<1x64xf32>
    %55 = vector.extract_strided_slice %4 {offsets = [0, 0], sizes = [1, 64], strides = [1, 1]} : vector<4x64xf32> to vector<1x64xf32>
    %56 = arith.subf %54, %55 : vector<1x64xf32>
    %cst_15 = arith.constant 0.000000e+00 : f32
    %57 = vector.broadcast %cst_15 : f32 to vector<1x64xf32>
    %58 = arith.maximumf %56, %57 : vector<1x64xf32>
    %59 = vector.extract_strided_slice %4 {offsets = [3, 0], sizes = [1, 64], strides = [1, 1]} : vector<4x64xf32> to vector<1x64xf32>
    %60 = vector.extract_strided_slice %4 {offsets = [1, 0], sizes = [1, 64], strides = [1, 1]} : vector<4x64xf32> to vector<1x64xf32>
    %61 = arith.subf %59, %60 : vector<1x64xf32>
    %cst_16 = arith.constant 0.000000e+00 : f32
    %62 = vector.broadcast %cst_16 : f32 to vector<1x64xf32>
    %63 = arith.maximumf %61, %62 : vector<1x64xf32>
    %64 = arith.mulf %58, %63 : vector<1x64xf32>
    %65 = vector.extract_strided_slice %7 {offsets = [2, 0], sizes = [1, 64], strides = [1, 1]} : vector<4x64xf32> to vector<1x64xf32>
    %66 = vector.extract_strided_slice %7 {offsets = [0, 0], sizes = [1, 64], strides = [1, 1]} : vector<4x64xf32> to vector<1x64xf32>
    %67 = arith.subf %65, %66 : vector<1x64xf32>
    %cst_17 = arith.constant 0.000000e+00 : f32
    %68 = vector.broadcast %cst_17 : f32 to vector<1x64xf32>
    %69 = arith.maximumf %67, %68 : vector<1x64xf32>
    %70 = vector.extract_strided_slice %7 {offsets = [3, 0], sizes = [1, 64], strides = [1, 1]} : vector<4x64xf32> to vector<1x64xf32>
    %71 = vector.extract_strided_slice %7 {offsets = [1, 0], sizes = [1, 64], strides = [1, 1]} : vector<4x64xf32> to vector<1x64xf32>
    %72 = arith.subf %70, %71 : vector<1x64xf32>
    %cst_18 = arith.constant 0.000000e+00 : f32
    %73 = vector.broadcast %cst_18 : f32 to vector<1x64xf32>
    %74 = arith.maximumf %72, %73 : vector<1x64xf32>
    %75 = arith.mulf %69, %74 : vector<1x64xf32>
    %76 = arith.addf %64, %75 : vector<1x64xf32>
    %77 = arith.subf %76, %53 : vector<1x64xf32>
    %cst_19 = arith.constant 1.000000e-07 : f32
    %78 = vector.broadcast %cst_19 : f32 to vector<1x64xf32>
    %79 = arith.addf %77, %78 : vector<1x64xf32>
    %80 = arith.divf %53, %79 : vector<1x64xf32>
    %cst_20 = arith.constant 0.000000e+00 : f32
    %81 = vector.broadcast %cst_20 : f32 to vector<1x64xf32>
    %82 = arith.subf %81, %5 : vector<1x64xf32>
    %83 = math.exp %82 : vector<1x64xf32>
    %cst_21 = arith.constant 1.000000e+00 : f32
    %84 = vector.broadcast %cst_21 : f32 to vector<1x64xf32>
    %85 = arith.addf %84, %83 : vector<1x64xf32>
    %cst_22 = arith.constant 1.000000e+00 : f32
    %86 = vector.broadcast %cst_22 : f32 to vector<1x64xf32>
    %87 = arith.divf %86, %85 : vector<1x64xf32>
    %cst_23 = arith.constant 0.000000e+00 : f32
    %88 = vector.broadcast %cst_23 : f32 to vector<1x64xf32>
    %89 = arith.maximumf %87, %88 : vector<1x64xf32>
    %90 = math.absf %87 : vector<1x64xf32>
    %cst_24 = arith.constant 0.000000e+00 : f32
    %91 = vector.broadcast %cst_24 : f32 to vector<1x64xf32>
    %92 = arith.subf %91, %90 : vector<1x64xf32>
    %93 = math.exp %92 : vector<1x64xf32>
    %94 = math.log1p %93 : vector<1x64xf32>
    %95 = arith.addf %89, %94 : vector<1x64xf32>
    %96 = arith.mulf %87, %80 : vector<1x64xf32>
    %97 = arith.subf %95, %96 : vector<1x64xf32>
    %98 = arith.mulf %97, %8 : vector<1x64xf32>
    %99 = vector.shape_cast %98 : vector<1x64xf32> to vector<1x1x64xf32>
    %cst_25 = arith.constant dense<0.000000e+00> : vector<1xf32>
    %100 = vector.multi_reduction <add>, %99, %cst_25 [1, 2] : vector<1x1x64xf32> to vector<1xf32>
    %101 = vector.shape_cast %100 : vector<1xf32> to vector<1x1x1xf32>
    %102 = vector.extract %101[0, 0, 0] : f32 from vector<1x1x1xf32>
    %103 = arith.divf %102, %15 : f32
    %cst_26 = arith.constant 0.000000e+00 : f32
    %104 = vector.broadcast %cst_26 : f32 to vector<1x64xf32>
    %105 = arith.maximumf %5, %104 : vector<1x64xf32>
    %106 = math.absf %5 : vector<1x64xf32>
    %cst_27 = arith.constant 0.000000e+00 : f32
    %107 = vector.broadcast %cst_27 : f32 to vector<1x64xf32>
    %108 = arith.subf %107, %106 : vector<1x64xf32>
    %109 = math.exp %108 : vector<1x64xf32>
    %110 = math.log1p %109 : vector<1x64xf32>
    %111 = arith.addf %105, %110 : vector<1x64xf32>
    %112 = vector.shape_cast %111 : vector<1x64xf32> to vector<1x1x64xf32>
    %cst_28 = arith.constant dense<0.000000e+00> : vector<1xf32>
    %113 = vector.multi_reduction <add>, %112, %cst_28 [1, 2] : vector<1x1x64xf32> to vector<1xf32>
    %114 = vector.shape_cast %113 : vector<1xf32> to vector<1x1x1xf32>
    %115 = vector.extract %114[0, 0, 0] : f32 from vector<1x1x1xf32>
    %cst_29 = arith.constant 6.400000e+01 : f32
    %116 = arith.divf %115, %cst_29 : f32
    %117 = arith.select %14, %103, %116 : f32
    %cst_30 = arith.constant 0.000000e+00 : f32
    %118 = vector.broadcast %cst_30 : f32 to vector<10x64xf32>
    %119 = arith.maximumf %6, %118 : vector<10x64xf32>
    %120 = math.absf %6 : vector<10x64xf32>
    %cst_31 = arith.constant 0.000000e+00 : f32
    %121 = vector.broadcast %cst_31 : f32 to vector<10x64xf32>
    %122 = arith.subf %121, %120 : vector<10x64xf32>
    %123 = math.exp %122 : vector<10x64xf32>
    %124 = math.log1p %123 : vector<10x64xf32>
    %125 = arith.addf %119, %124 : vector<10x64xf32>
    %126 = arith.mulf %6, %9 : vector<10x64xf32>
    %127 = arith.subf %125, %126 : vector<10x64xf32>
    %128 = vector.broadcast %8 : vector<1x64xf32> to vector<10x64xf32>
    %129 = arith.mulf %127, %128 : vector<10x64xf32>
    %130 = vector.shape_cast %129 : vector<10x64xf32> to vector<1x10x64xf32>
    %cst_32 = arith.constant dense<0.000000e+00> : vector<1xf32>
    %131 = vector.multi_reduction <add>, %130, %cst_32 [1, 2] : vector<1x10x64xf32> to vector<1xf32>
    %132 = vector.shape_cast %131 : vector<1xf32> to vector<1x1x1xf32>
    %133 = vector.extract %132[0, 0, 0] : f32 from vector<1x1x1xf32>
    %cst_33 = arith.constant 1.000000e+01 : f32
    %134 = arith.mulf %15, %cst_33 : f32
    %135 = arith.divf %133, %134 : f32
    %cst_34 = arith.constant 0.000000e+00 : f32
    %136 = arith.select %14, %135, %cst_34 : f32
    %137 = tpu.iota {dimensions = array<i32: 2>} : vector<1x1x8xi32>
    %c0_i32 = arith.constant 0 : i32
    %138 = vector.broadcast %c0_i32 : i32 to vector<1x1x8xi32>
    %139 = arith.cmpi eq, %137, %138 : vector<1x1x8xi32>
    %cst_35 = arith.constant 0.000000e+00 : f32
    %140 = vector.broadcast %34 : f32 to vector<1x1x8xf32>
    %141 = vector.broadcast %cst_35 : f32 to vector<1x1x8xf32>
    %142 = arith.select %139, %140, %141 : vector<1x1x8xi1>, vector<1x1x8xf32>
    %c1_i32 = arith.constant 1 : i32
    %143 = vector.broadcast %c1_i32 : i32 to vector<1x1x8xi32>
    %144 = arith.cmpi eq, %137, %143 : vector<1x1x8xi32>
    %cst_36 = arith.constant 0.000000e+00 : f32
    %145 = vector.broadcast %117 : f32 to vector<1x1x8xf32>
    %146 = vector.broadcast %cst_36 : f32 to vector<1x1x8xf32>
    %147 = arith.select %144, %145, %146 : vector<1x1x8xi1>, vector<1x1x8xf32>
    %148 = arith.addf %142, %147 : vector<1x1x8xf32>
    %c2_i32 = arith.constant 2 : i32
    %149 = vector.broadcast %c2_i32 : i32 to vector<1x1x8xi32>
    %150 = arith.cmpi eq, %137, %149 : vector<1x1x8xi32>
    %cst_37 = arith.constant 0.000000e+00 : f32
    %151 = vector.broadcast %136 : f32 to vector<1x1x8xf32>
    %152 = vector.broadcast %cst_37 : f32 to vector<1x1x8xf32>
    %153 = arith.select %150, %151, %152 : vector<1x1x8xi1>, vector<1x1x8xf32>
    %154 = arith.addf %148, %153 : vector<1x1x8xf32>
    %c0_38 = arith.constant 0 : index
    %c0_39 = arith.constant 0 : index
    %c0_40 = arith.constant 0 : index
    %155 = vector.load %arg3[%c0_38, %c0_39, %c0_40] : memref<1x1x8xf32, #tpu.memory_space<vmem>>, vector<1x1x8xf32>
    tpu.vector_store %arg3[%c0_38, %c0_39, %c0_40], %154 {strides = array<i32>} : memref<1x1x8xf32, #tpu.memory_space<vmem>>, vector<1x1x8xf32>,
    return
  }
  func.func @transform_0(%arg0: i32) -> (i32, i32, i32) {
    %c0_i32 = arith.constant 0 : i32
    %c0_i32_0 = arith.constant 0 : i32
    %c0_i32_1 = arith.constant 0 : i32
    return %arg0, %c0_i32, %c0_i32_0 : i32, i32, i32
  }
  func.func @transform_1(%arg0: i32) -> (i32, i32, i32) {
    %c0_i32 = arith.constant 0 : i32
    %c0_i32_0 = arith.constant 0 : i32
    %c0_i32_1 = arith.constant 0 : i32
    return %arg0, %c0_i32, %c0_i32_0 : i32, i32, i32
  }
  func.func @transform_2(%arg0: i32) -> (i32, i32, i32) {
    %c0_i32 = arith.constant 0 : i32
    %c0_i32_0 = arith.constant 0 : i32
    %c0_i32_1 = arith.constant 0 : i32
    return %arg0, %c0_i32, %c0_i32_0 : i32, i32, i32
  }
}

</mosaic_0001>

<bundles_post_ra>
// kernel: yolo_loss.2
= control target key start
LH: loop header
LB: loop body
LE: loop exit
PB: predicated region body
PF: predicated region fallthrough
CT: control target
= control target key end

     0   :  { %s554_s12 = smov 0   ;;  %s608_s0 = inlined_call_operand.vmem [shape: f32[2,15,64], index: 0, kind: input, shape index: {}]   ;;  %s609_s1 = inlined_call_operand.vmem [shape: f32[2,8,15], index: 1, kind: input, shape index: {}]   ;;  %s610_s2 = inlined_call_operand.vmem [shape: f32[2,8,64], index: 2, kind: output, shape index: {0}]   ;;  %s611_s3 = inlined_call_operand.vmem [shape: f32[2,8,64], index: 3, kind: output, shape index: {1}]  }
   0x1 LB: > { %s468_s13 = sadd.s32 4294967295, %s524_s12   ;;  %p472_p0 = scmp.ge.s32.totalorder %s524_s12, 1  ;;  %s524_s12 = sphi %s554_s12, %s14_s12  }
   0x2   : > { %p149_p1 = scmp.lt.s32.totalorder %s524_s12, 3 }
   0x4   : > { %p150_p2 = pnand %p472_p0, %p149_p1 }
   0x5   : > { %p180_p3 = scmp.lt.s32.totalorder (!%p150_p2), %s468_s13, 1  ;;  %s526_s22 = smov (!%p150_p2), 123  }
   0x6   : > { %153 = sbr.rel (%p150_p2) target bundleno = 419 (0x1a3), region = 28  ;;  %s527_s23 = smov (!%p150_p2), 2  }
   0x7   : > { %s530_s24 = smov (!%p150_p2), 127  }
   0xb   : > { %s613_s13 = smov (!%p180_p3, %s468_s13), 1  ;;  %vm332_vm0 = vcmask 1041408   ;;  %vm305_vm1 = vcmask 1042432   ;;  %vm313_vm4 = vcmask 517120   ;;  %vm311_vm5 = vcmask 523264  }
   0xc   : > { %s562_s14 = sshll.u32 %s613_s13, 3  ;;  %s482_s15 = sshll.u32 %s613_s13, 4  ;;  %v528_v36 = vmov 3   ;;  %v529_v37 = vmov 0   ;;  %vm329_vm6 = vcmask 80896   ;;  %v531_v46 = vmov 1  }
   0xd   : > { %s188_s18 = scalar_lea.vmem %s609_s1, %s562_s14  ;;  %s184_s21 = scalar_lea.vmem %s608_s0, %s482_s15  ;;  %502 = vset.pattern.permute.xlu0 %v528_v36  ;;  %499 = vset.pattern.permute.xlu1 %v529_v37  ;;  %v532_v47 = vmov 2   ;;  %v533_v48 = vmov 4  }
   0xe   : > { %v571_v0 = vld [vmem:[%s188_s18] sm:$0xff]  ;;  %v198_v1 = vld [vmem:[%s184_s21 + $0x8] sm:$0x7f]  ;;  %500 = vset.pattern.permute.xlu2 %v531_v46  ;;  %s192_s27 = scalar_lea.vmem %s610_s2, %s562_s14  ;;  %s196_s30 = scalar_lea.vmem %s611_s3, %s562_s14 }
   0xf   : > { %322 = vrot.lane.b32.xlu0 %v571_v0, %s526_s22  ;;  %v326_v2 = vrot.slane %v198_v1, 5  ;;  %v276_v3 = vand.u32 2147483647, %v198_v1  ;;  %v575_v6 = vld [vmem:[%s184_s21] sm:$0xff]  ;;  %v274_v23 = vmax.f32 %v198_v1, 0.0  ;;  %209 = vperm.xlu2 %500, %v571_v0   ;;  %v362_v49 = vsub.f32 1.0, %v571_v0 }
  0x10   : > { %v275_v7 = vand.u32 2147483647, %v575_v6  ;;  %v325_v17 = vrot.slane %v575_v6, 5  ;;  %v273_v30 = vmax.f32 %v575_v6, 0.0  ;;  %v231_v54 = vrot.slane %v575_v6, 6 }
  0x11   : > { %478 = vmatpush.msk.msra.mxu0 %vm332_vm0, %v326_v2  ;;  %v278_v4 = vsub.f32 0.0, %v276_v3  ;;  %v363_v50 = vmul.f32 1e+08, %v362_v49  ;;  %v200_v56 = vperm.slane %v575_v6, 0  ;;  %v207_v57 = vperm.slane %v575_v6, 1 }
  0x12   : > { %v277_v8 = vsub.f32 0.0, %v275_v7  ;;  %v327_v18 = vsel %vm305_vm1, %v325_v17, %v326_v2  ;;  %v233_v55 = vsub.f32 %v575_v6, %v231_v54  ;;  %v213_v58 = vperm.slane %v575_v6, 2 }
  0x13   : > { %v281_v5 = vmul.f32 1.442695, %v278_v4  ;;  %350 = vmatpush.msra.mxu0 %v327_v18  ;;  %v219_v60 = vperm.slane %v575_v6, 3 }
  0x14   : > { %v279_v10 = vmul.f32 1.442695, %v277_v8  ;;  %v234_v61 = vmax.f32 %v233_v55, 0.0 }
  0x15   : > { %506 = vpow2.f32 %v281_v5 }
  0x16   : > { %508 = vpow2.f32 %v279_v10  ;;  %v236_v4 = vrot.slane %v234_v61, 1 }
  0x17   : > { %239 = vrot.lane.b32.xlu0 %v571_v0, %s527_s23  ;;  %501 = vset.pattern.permute.xlu2 %v532_v47 }
  0x18   : > { %215 = vperm.xlu2 %501, %v571_v0   ;;  %v238_v8 = vmul.f32 %v236_v4, %v234_v61 }
  0x1b   : > { %v507_v9 = vpop.eup %506 }
  0x1c   : > { %v292_v11 = vadd.f32 1.0, %v507_v9  ;;  %v295_v12 = vmul.f32 -0.5, %v507_v9  ;;  %v509_v13 = vpop.eup %508  ;;  %v298_v16 = vand.u32 2147483647, %v507_v9 }
  0x1d   : > { %v283_v21 = vadd.f32 1.0, %v509_v13  ;;  %v286_v22 = vmul.f32 -0.5, %v509_v13  ;;  %v289_v26 = vand.u32 2147483647, %v509_v13 }
  0x1e   : > { %510 = vlog2.f32 %v292_v11  ;;  %v296_v14 = vadd.f32 1.0, %v295_v12  ;;  %vm299_vm2 = vcmp.lt.f32.partialorder %v298_v16, 0.0004427343  ;;  %v249_v11 = vperm.slane %v238_v8, 2 }
  0x1f   : > { %512 = vlog2.f32 %v283_v21  ;;  %v287_v24 = vadd.f32 1.0, %v286_v22  ;;  %vm290_vm3 = vcmp.lt.f32.partialorder %v289_v26, 0.0004427343  ;;  %221 = vperm.xlu0 %502, %v571_v0  }
  0x20   : > { %v297_v20 = vmul.f32 %v507_v9, %v296_v14  ;;  %504 = vset.pattern.permute.xlu2 %v533_v48 }
  0x21   : > { %v288_v28 = vmul.f32 %v509_v13, %v287_v24  ;;  %366 = vperm.xlu2 %504, %v363_v50  }
  0x24   : > { %v511_v15 = vpop.eup %510 }
  0x25   : > { %v294_v19 = vmul.f32 0.6931472, %v511_v15  ;;  %v513_v29 = vpop.eup %512 }
  0x26   : > { %v285_v31 = vmul.f32 0.6931472, %v513_v29 }
  0x27   : > { %v300_v25 = vsel %vm299_vm2, %v297_v20, %v294_v19  ;;  %505 = vset.pattern.permute.xlu0 %v533_v48 }
  0x28   : > { %v302_v27 = vadd.f32 %v300_v25, %v274_v23  ;;  %v291_v33 = vsel %vm290_vm3, %v288_v28, %v285_v31 }
  0x29   : > { %v301_v34 = vadd.f32 %v291_v33, %v273_v30 }
  0x2a   : > { %v307_v32 = vrot.slane %v302_v27, 5 }
  0x2b   : > { %v306_v35 = vrot.slane %v301_v34, 5 }
  0x2c   : > { %v314_v38 = vsel %vm313_vm4, %v307_v32, 0.0 }
  0x2d   : > { %v308_v39 = vsel %vm305_vm1, %v306_v35, %v307_v32 }
  0x2e   : > { %v312_v40 = vsel %vm311_vm5, %v308_v39, 0.0 }
  0x2f   : > { %v315_v41 = vadd.f32 %v314_v38, %v312_v40 }
  0x31   : > { %v316_v18 = vrot.slane %v315_v41, 4 }
  0x33   : > { %v317_v23 = vadd.f32 %v316_v18, %v315_v41 }
  0x35   : > { %v318_v27 = vrot.slane %v317_v23, 2 }
  0x37   : > { %v319_v31 = vadd.f32 %v318_v27, %v317_v23 }
  0x39   : > { %v320_v32 = vrot.slane %v319_v31, 1 }
  0x3b   : > { %v321_v34 = vadd.f32 %v320_v32, %v319_v31 }
  0x69   : > { %v210_v53 = vpop.permute.xlu2 %209 }
  0x6a   : > { %v212_v1 = vmax.f32 %v207_v57, %v210_v53 }
  0x72   : > { %v216_v62 = vpop.permute.xlu2 %215 }
  0x73   : > { %v218_v2 = vmin.f32 %v213_v58, %v216_v62 }
  0x7b   : > { %v367_v40 = vpop.permute.xlu2 %366 }
  0x81   : > { %v323_v42 = vpop.permute.xlu0 %322 }
  0x82   : > { %479 = vmatmul.msk.f32.vlgmr.msra.gmra.mxu0 %vm329_vm6, %v323_v42 }
  0x89   : > { %v240_v43 = vpop.permute.xlu0 %239 }
  0x8a   : > { %v242_v44 = vsub.f32 %v571_v0, %v240_v43 }
  0x8c   : > { %v243_v45 = vmax.f32 %v242_v44, 0.0 }
  0x8e   : > { %245 = vrot.lane.b32.xlu1 %v243_v45, %s530_s24 }
  0x91   : > { %v222_v63 = vpop.permute.xlu0 %221 }
  0x92   : > { %v224_v3 = vmin.f32 %v219_v60, %v222_v63 }
  0x94   : > { %v227_v7 = vsub.f32 %v224_v3, %v212_v1 }
  0x96   : > { %203 = vperm.xlu1 %499, %v571_v0   ;;  %v228_v10 = vmax.f32 %v227_v7, 0.0 }
  0x9e   : > { %503 = vset.pattern.permute.xlu1 %v532_v47 }
  0xff   : > { %v352_v36 = vpop.f32.mrf.mxu0 }
 0x100   : > { %v246_v51 = vpop.permute.xlu1 %245  ;;  %v355_v38 = vsub.f32 %v321_v34, %v352_v36 }
 0x101   : > { %v248_v52 = vmul.f32 %v246_v51, %v243_v45 }
 0x103   : > { %252 = vperm.xlu1 %503, %v248_v52  }
 0x108   : > { %v204_v59 = vpop.permute.xlu1 %203 }
 0x109   : > { %v206_v0 = vmax.f32 %v200_v56, %v204_v59 }
 0x10b   : > { %v225_v5 = vsub.f32 %v218_v2, %v206_v0 }
 0x10d   : > { %v226_v9 = vmax.f32 %v225_v5, 0.0 }
 0x10f   : > { %v229_v13 = vmul.f32 %v228_v10, %v226_v9 }
 0x175   : > { %v253_v12 = vpop.permute.xlu1 %252 }
 0x176   : > { %v255_v14 = vadd.f32 %v253_v12, %v249_v11 }
 0x178   : > { %v256_v15 = vsub.f32 %v255_v14, %v229_v13 }
 0x17a   : > { %v257_v16 = vadd.f32 1e-07, %v256_v15 }
 0x17c   : > { %514 = vrcp.f32 %v257_v16  ;;  %v269_v20 = vand.u32 2147483648, %v257_v16  ;;  %v267_v22 = vand.u32 2147483647, %v257_v16  ;;  %vm263_vm8 = vweird.f32 %v257_v16 }
 0x17e   : > { %v270_v25 = vor.u32 1.1754944e-38, %v269_v20  ;;  %vm268_vm10 = vcmp.eq.f32.partialorder %v267_v22, 8.507059e+37 }
 0x182   : > { %v515_v6 = vpop.eup %514 }
 0x183   : > { %v259_v17 = vmul.f32 %v515_v6, %v257_v16  ;;  %vm264_vm7 = vweird.f32 %v515_v6 }
 0x184   : > { %vm265_vm9 = vmor %vm263_vm8, %vm264_vm7 }
 0x185   : > { %v260_v19 = vsub.f32 1.0, %v259_v17 }
 0x187   : > { %v261_v21 = vmul.f32 %v515_v6, %v260_v19 }
 0x189   : > { %v262_v24 = vadd.f32 %v515_v6, %v261_v21 }
 0x18b   : > { %v266_v26 = vsel %vm265_vm9, %v515_v6, %v262_v24 }
 0x18c   : > { %v271_v28 = vsel %vm268_vm10, %v270_v25, %v266_v26 }
 0x18d   : > { %v272_v29 = vmul.f32 %v271_v28, %v229_v13 }
 0x18f   : > { %370 = vst.msk [vmem:[%s192_s27] sm:$0xff] %vm311_vm5, %v272_v29  ;;  %v356_v30 = vadd.f32 1e-08, %v272_v29 }
 0x191   : > { %516 = vlog2.f32 %v356_v30 }
 0x197   : > { %v517_v33 = vpop.eup %516 }
 0x198   : > { %v358_v35 = vmul.f32 0.6931472, %v517_v33 }
 0x19a   : > { %v359_v37 = vsub.f32 0.0, %v358_v35 }
 0x19c   : > { %v360_v39 = vmul.f32 3.0, %v359_v37 }
 0x19e   : > { %v361_v41 = vadd.f32 %v360_v39, %v355_v38 }
 0x1a0   : > { %v369_v42 = vadd.f32 %v367_v40, %v361_v41 }
 0x1a2   : > { %371 = vst.msk [vmem:[%s196_s30] sm:$0xff] %vm311_vm5, %v369_v42 }
 0x1a3 PF: > { %s14_s12 = sadd.s32 1, %s524_s12  }
 0x1a4   : > { %p11_p4 = scmp.ge.s32.totalorder %s14_s12, 4  }
 0x1a6   :  { %13 = sbr.rel (!%p11_p4) target bundleno = 1 (0x1), region = 73 }

// kernel: yolo_loss.3
= control target key start
LH: loop header
LB: loop body
LE: loop exit
PB: predicated region body
PF: predicated region fallthrough
CT: control target
= control target key end

     0   :  { %s602_s9 = smov 0   ;;  %s740_s0 = inlined_call_operand.vmem [shape: f32[2,15,64], index: 0, kind: input, shape index: {}]   ;;  %s741_s1 = inlined_call_operand.vmem [shape: f32[2,15,64], index: 1, kind: input, shape index: {}]   ;;  %s742_s2 = inlined_call_operand.vmem [shape: f32[2,1,8], index: 2, kind: output, shape index: {}]  }
   0x1 LB: > { %s509_s10 = sadd.s32 4294967295, %s583_s9   ;;  %p513_p0 = scmp.ge.s32.totalorder %s583_s9, 1  ;;  %s583_s9 = sphi %s602_s9, %s12_s9  }
   0x2   : > { %p122_p1 = scmp.lt.s32.totalorder %s583_s9, 3 }
   0x4   : > { %p123_p2 = pnand %p513_p0, %p122_p1 }
   0x5   : > { %p147_p3 = scmp.lt.s32.totalorder (!%p123_p2), %s509_s10, 1  ;;  %s586_s19 = smov (!%p123_p2), 1.0  }
   0x6   : > { %126 = sbr.rel (%p123_p2) target bundleno = 282 (0x11a), region = 28 }
   0xb   : > { %s750_s10 = smov (!%p147_p3, %s509_s10), 1  ;;  %vm167_vm0 = vcmask 516096   ;;  %vm189_vm9 = vcmask 519168   ;;  %vm396_vm11 = vcmask 1042432   ;;  %vm404_vm12 = vcmask 517120  }
   0xc   : > { %s521_s11 = sshll.u32 %s750_s10, 4  ;;  %vm402_vm13 = vcmask 523264  }
   0xd   : > { %s616_s14 = scalar_lea.vmem %s741_s1, %s521_s11  ;;  %s151_s17 = scalar_lea.vmem %s740_s0, %s521_s11 }
   0xe   : > { %v622_v0 = vld [vmem:[%s616_s14] sm:$0xff]  ;;  %v634_v8 = vld [vmem:[%s151_s17 + $0x8] sm:$0x7f]  ;;  %s159_s11 = scalar_lea.vmem %s742_s2, %s750_s10 }
   0xf   : > { %v624_v1 = vld [vmem:[%s151_s17] sm:$0xff]  ;;  %v165_v2 = vrot.slane %v622_v0, 4  ;;  %v239_v6 = vrot.slane %v622_v0, 6  ;;  %v374_v15 = vand.u32 2147483647, %v634_v8 }
  0x10   : > { %v219_v3 = vmax.f32 %v624_v1, %v622_v0  ;;  %v220_v4 = vmin.f32 %v624_v1, %v622_v0  ;;  %v231_v5 = vrot.slane %v624_v1, 6  ;;  %v265_v7 = vsub.f32 0.0, %v624_v1 }
  0x11   : > { %v168_v9 = vsel %vm167_vm0, %v165_v2, 0.0  ;;  %v336_v12 = vand.u32 2147483647, %v624_v1  ;;  %v241_v13 = vsub.f32 %v622_v0, %v239_v6  ;;  %v375_v20 = vsub.f32 0.0, %v374_v15 }
  0x12   : > { %v222_v10 = vrot.slane %v219_v3, 6  ;;  %v233_v11 = vsub.f32 %v624_v1, %v231_v5  ;;  %169 = vadd.xlane.f32.xlu0 %v168_v9  ;;  %v266_v14 = vmul.f32 1.442695, %v265_v7  ;;  %v180_v58 = vsub.f32 %v624_v1, %v622_v0  ;;  %v163_v5 = vld [vmem:[%s616_s14 + $0x8] sm:$0x7f] }
  0x13   : > { %v337_v18 = vsub.f32 0.0, %v336_v12  ;;  %v242_v19 = vmax.f32 %v241_v13, 0.0  ;;  %v376_v25 = vmul.f32 1.442695, %v375_v20  ;;  %v335_v59 = vmax.f32 %v624_v1, 0.0 }
  0x14   : > { %v224_v16 = vsub.f32 %v220_v4, %v222_v10  ;;  %v234_v17 = vmax.f32 %v233_v11, 0.0  ;;  %551 = vpow2.f32 %v266_v14  ;;  %v373_v2 = vmax.f32 %v634_v8, 0.0 }
  0x15   : > { %v338_v23 = vmul.f32 1.442695, %v337_v18  ;;  %v244_v24 = vrot.slane %v242_v19, 1  ;;  %v181_v4 = vand.u32 2147483647, %v180_v58  ;;  %v388_v10 = vmul.f32 %v622_v0, %v624_v1 }
  0x16   : > { %v225_v21 = vmax.f32 %v224_v16, 0.0  ;;  %v236_v22 = vrot.slane %v234_v17, 1  ;;  %v187_v15 = vperm.slane %v622_v0, 4 }
  0x17   : > { %553 = vpow2.f32 %v338_v23  ;;  %v246_v28 = vmul.f32 %v244_v24, %v242_v19  ;;  %v183_v12 = vmul.f32 0.5, %v181_v4  ;;  %v518_v1 = vadd.f32 -0.5, %v181_v4 }
  0x18   : > { %v227_v26 = vrot.slane %v225_v21, 1  ;;  %v238_v27 = vmul.f32 %v236_v22, %v234_v17  ;;  %555 = vpow2.f32 %v376_v25  ;;  %v389_v17 = vmul.f32 %v163_v5, %v634_v8 }
  0x19   : > { %v184_v20 = vmul.f32 %v183_v12, %v181_v4  ;;  %vm182_vm8 = vcmp.lt.f32.partialorder %v181_v4, 1.0 }
  0x1a   : > { %v641_v29 = vmul.f32 %v227_v26, %v225_v21  ;;  %v552_v30 = vpop.eup %551  ;;  %v247_v31 = vadd.f32 %v246_v28, %v238_v27 }
  0x1b   : > { %v268_v32 = vadd.f32 1.0, %v552_v30  ;;  %v186_v26 = vsel %vm182_vm8, %v184_v20, %v518_v1 }
  0x1c   : > { %v248_v33 = vsub.f32 %v247_v31, %v641_v29  ;;  %v188_v27 = vmul.f32 %v187_v15, %v186_v26 }
  0x1d   : > { %v554_v34 = vpop.eup %553  ;;  %557 = vrcp.f32 %v268_v32  ;;  %v278_v39 = vand.u32 2147483647, %v268_v32  ;;  %vm274_vm1 = vweird.f32 %v268_v32  ;;  %v280_v44 = vand.u32 2147483648, %v268_v32 }
  0x1e   : > { %v556_v35 = vpop.eup %555  ;;  %v644_v36 = vadd.f32 1e-07, %v248_v33  ;;  %v340_v37 = vadd.f32 1.0, %v554_v34  ;;  %v343_v41 = vmul.f32 -0.5, %v554_v34  ;;  %v346_v50 = vand.u32 2147483647, %v554_v34 }
  0x1f   : > { %v378_v38 = vadd.f32 1.0, %v556_v35  ;;  %v381_v42 = vmul.f32 -0.5, %v556_v35  ;;  %vm649_vm3 = vcmp.eq.f32.partialorder %v278_v39, 8.507059e+37  ;;  %v384_v55 = vand.u32 2147483647, %v556_v35 }
  0x20   : > { %559 = vrcp.f32 %v644_v36  ;;  %v344_v45 = vadd.f32 1.0, %v343_v41  ;;  %v281_v63 = vor.u32 1.1754944e-38, %v280_v44  ;;  %vm347_vm5 = vcmp.lt.f32.partialorder %v346_v50, 0.0004427343 }
  0x21   : > { %561 = vlog2.f32 %v340_v37  ;;  %v382_v46 = vadd.f32 1.0, %v381_v42  ;;  %vm385_vm6 = vcmp.lt.f32.partialorder %v384_v55, 0.0004427343  ;;  %vm255_vm7 = vweird.f32 %v644_v36 }
  0x22   : > { %563 = vlog2.f32 %v378_v38  ;;  %v345_v53 = vmul.f32 %v554_v34, %v344_v45  ;;  %v259_v21 = vand.u32 2147483647, %v644_v36  ;;  %v261_v24 = vand.u32 2147483648, %v644_v36 }
  0x23   : > { %v558_v40 = vpop.eup %557  ;;  %v383_v54 = vmul.f32 %v556_v35, %v382_v46 }
  0x24   : > { %v270_v43 = vmul.f32 %v558_v40, %v268_v32  ;;  %vm275_vm2 = vweird.f32 %v558_v40  ;;  %v190_v32 = vsel %vm189_vm9, %v188_v27, 0.0  ;;  %v262_v38 = vor.u32 1.1754944e-38, %v261_v24 }
  0x25   : > { %vm659_vm4 = vmor %vm274_vm1, %vm275_vm2  ;;  %191 = vadd.xlane.f32.xlu0 %v190_v32  ;;  %vm260_vm15 = vcmp.eq.f32.partialorder %v259_v21, 8.507059e+37 }
  0x26   : > { %v647_v47 = vpop.eup %559  ;;  %v271_v48 = vsub.f32 1.0, %v270_v43 }
  0x27   : > { %v562_v51 = vpop.eup %561  ;;  %v251_v52 = vmul.f32 %v647_v47, %v644_v36  ;;  %vm256_vm10 = vweird.f32 %v647_v47 }
  0x28   : > { %v564_v56 = vpop.eup %563  ;;  %v272_v57 = vmul.f32 %v558_v40, %v271_v48  ;;  %v342_v60 = vmul.f32 0.6931472, %v562_v51  ;;  %vm257_vm14 = vmor %vm255_vm7, %vm256_vm10 }
  0x29   : > { %v252_v61 = vsub.f32 1.0, %v251_v52  ;;  %v380_v7 = vmul.f32 0.6931472, %v564_v56 }
  0x2a   : > { %v273_v3 = vadd.f32 %v558_v40, %v272_v57  ;;  %v348_v6 = vsel %vm347_vm5, %v345_v53, %v342_v60 }
  0x2b   : > { %v665_v9 = vadd.f32 %v348_v6, %v335_v59  ;;  %v386_v13 = vsel %vm385_vm6, %v383_v54, %v380_v7  ;;  %v253_v18 = vmul.f32 %v647_v47, %v252_v61 }
  0x2c   : > { %v277_v11 = vsel %vm659_vm4, %v558_v40, %v273_v3  ;;  %v387_v16 = vadd.f32 %v386_v13, %v373_v2 }
  0x2d   : > { %v282_v14 = vsel %vm649_vm3, %v281_v63, %v277_v11  ;;  %v390_v22 = vsub.f32 %v665_v9, %v388_v10  ;;  %v254_v30 = vadd.f32 %v647_v47, %v253_v18 }
  0x2e   : > { %v285_v19 = vand.u32 2147483647, %v282_v14  ;;  %v391_v23 = vsub.f32 %v387_v16, %v389_v17  ;;  %v284_v52 = vmax.f32 %v282_v14, 0.0 }
  0x2f   : > { %v392_v8 = vmul.f32 %v390_v22, %v187_v15  ;;  %v258_v40 = vsel %vm257_vm14, %v647_v47, %v254_v30 }
  0x30   : > { %v286_v25 = vsub.f32 0.0, %v285_v19  ;;  %v393_v28 = vmul.f32 %v391_v23, %v187_v15  ;;  %v263_v43 = vsel %vm260_vm15, %v262_v38, %v258_v40 }
  0x31   : > { %v397_v33 = vrot.slane %v392_v8, 5  ;;  %v264_v46 = vmul.f32 %v263_v43, %v641_v29  ;;  %v351_v29 = vrot.slane %v665_v9, 4  ;;  %v585_v9 = vmov 64.0  }
  0x32   : > { %v287_v31 = vmul.f32 1.442695, %v286_v25  ;;  %v398_v34 = vrot.slane %v393_v28, 5 }
  0x33   : > { %v300_v49 = vrot.slane %v264_v46, 6  ;;  %v353_v60 = vsel %vm167_vm0, %v351_v29, 0.0 }
  0x34   : > { %565 = vpow2.f32 %v287_v31  ;;  %v399_v35 = vsel %vm396_vm11, %v397_v33, %v398_v34  ;;  %v405_v37 = vsel %vm404_vm12, %v398_v34, 0.0 }
  0x35   : > { %v403_v39 = vsel %vm402_vm13, %v399_v35, 0.0  ;;  %v302_v54 = vmul.f32 %v300_v49, %v282_v14 }
  0x36   : > { %v406_v41 = vadd.f32 %v405_v37, %v403_v39 }
  0x38   : > { %407 = vadd.xlane.f32.xlu2 %v406_v41 }
  0x3a   : > { %v566_v42 = vpop.eup %565 }
  0x3b   : > { %v289_v44 = vadd.f32 1.0, %v566_v42  ;;  %v292_v45 = vmul.f32 -0.5, %v566_v42  ;;  %v295_v48 = vand.u32 2147483647, %v566_v42 }
  0x3d   : > { %567 = vlog2.f32 %v289_v44  ;;  %v293_v36 = vadd.f32 1.0, %v292_v45  ;;  %vm296_vm1 = vcmp.lt.f32.partialorder %v295_v48, 0.0004427343 }
  0x3e   : > { %569 = vrcp.f32 %v585_v9 }
  0x3f   : > { %v294_v50 = vmul.f32 %v566_v42, %v293_v36 }
  0x43   : > { %v568_v51 = vpop.eup %567 }
  0x44   : > { %v291_v53 = vmul.f32 0.6931472, %v568_v51  ;;  %v690_v15 = vpop.eup %569 }
  0x45   : > { %v364_v19 = vmul.f32 64.0, %v690_v15  ;;  %vm368_vm2 = vweird.f32 %v690_v15 }
  0x46   : > { %v297_v47 = vsel %vm296_vm1, %v294_v50, %v291_v53 }
  0x47   : > { %v298_v55 = vadd.f32 %v297_v47, %v284_v52  ;;  %v365_v24 = vsub.f32 1.0, %v364_v19 }
  0x49   : > { %v303_v56 = vsub.f32 %v298_v55, %v302_v54  ;;  %v366_v30 = vmul.f32 %v690_v15, %v365_v24 }
  0x4b   : > { %v304_v57 = vmul.f32 %v303_v56, %v622_v0  ;;  %v367_v42 = vadd.f32 %v690_v15, %v366_v30 }
  0x4d   : > { %v306_v58 = vrot.slane %v304_v57, 4 }
  0x4f   : > { %v308_v59 = vsel %vm167_vm0, %v306_v58, 0.0 }
  0x50   : > { %309 = vadd.xlane.f32.xlu1 %v308_v59 }
  0x58   : > { %354 = vadd.xlane.f32.xlu1 %v353_v60 }
  0x85   : > { %v170_v61 = vpop.xlane.xlu0 %169 }
  0x86   : > { %v171_v62 = vrot.slane %v170_v61, 4 }
  0x88   : > { %v172_v63 = vadd.f32 %v171_v62, %v170_v61 }
  0x8a   : > { %v173_v2 = vrot.slane %v172_v63, 2 }
  0x8c   : > { %v174_v3 = vadd.f32 %v173_v2, %v172_v63 }
  0x8e   : > { %v175_v4 = vrot.slane %v174_v3, 1 }
  0x90   : > { %v176_v5 = vadd.f32 %v175_v4, %v174_v3 }
  0x92   : > { %523 = vpush %v176_v5 }
  0x98   : > { %v192_v6 = vpop.xlane.xlu0 %191 }
  0x99   : > { %v193_v7 = vrot.slane %v192_v6, 4 }
  0x9b   : > { %v194_v0 = vadd.f32 %v193_v7, %v192_v6  ;;  %v369_v7 = vsel %vm368_vm2, %v690_v15, %v367_v42 }
  0x9d   : > { %v195_v10 = vrot.slane %v194_v0, 2 }
  0x9f   : > { %v196_v11 = vadd.f32 %v195_v10, %v194_v0 }
  0xa1   : > { %v197_v12 = vrot.slane %v196_v11, 1 }
  0xa3   : > { %v198_v13 = vadd.f32 %v197_v12, %v196_v11  ;;  %v435_v12 = vlaneseq }
  0xa5   : > { %525 = vpush %v198_v13  ;;  %v436_v13 = vand.u32 127, %v435_v12 }
  0xa7   : > { %vm437_vm14 = vcmp.eq.s32.totalorder %v436_v13, 0  ;;  %vm440_vm15 = vcmp.eq.s32.totalorder %v436_v13, 1  ;;  %vm444_vm1 = vcmp.eq.s32.totalorder %v436_v13, 2 }
  0xab   : > { %v408_v14 = vpop.xlane.xlu2 %407 }
  0xac   : > { %v409_v17 = vrot.slane %v408_v14, 4 }
  0xae   : > { %v410_v21 = vadd.f32 %v409_v17, %v408_v14 }
  0xb0   : > { %v411_v25 = vrot.slane %v410_v21, 2 }
  0xb2   : > { %v412_v38 = vadd.f32 %v411_v25, %v410_v21 }
  0xb4   : > { %v413_v3 = vrot.slane %v412_v38, 1 }
  0xb6   : > { %v414_v10 = vadd.f32 %v413_v3, %v412_v38 }
  0xc3   : > { %v310_v16 = vpop.xlane.xlu1 %309  ;;  %s692_s18 = spop %523 }
  0xc4   : > { %v311_v18 = vrot.slane %v310_v16, 4  ;;  %s179_s20 = smax.f32 %s586_s19, %s692_s18  ;;  %p178_p4 = scmp.gt.f32.partialorder %s692_s18, 0.0 }
  0xc5   : > { %s200_s21 = smul.f32 4.0, %s179_s20  ;;  %v696_v20 = vstv %s179_s20 }
  0xc6   : > { %571 = vrcp.f32 %v696_v20  ;;  %s416_s22 = smul.f32 10.0, %s179_s20  ;;  %v312_v22 = vadd.f32 %v311_v18, %v310_v16  ;;  %vm324_vm0 = vweird.f32 %v696_v20  ;;  %v328_v52 = vand.u32 2147483647, %v696_v20 }
  0xc7   : > { %v201_v1 = vstv %s200_s21  ;;  %v330_v53 = vand.u32 2147483648, %v696_v20 }
  0xc8   : > { %573 = vrcp.f32 %v201_v1  ;;  %v699_v23 = vstv %s416_s22  ;;  %v313_v8 = vrot.slane %v312_v22, 2  ;;  %v213_v46 = vand.u32 2147483648, %v201_v1 }
  0xc9   : > { %575 = vrcp.f32 %v699_v23  ;;  %v211_v49 = vand.u32 2147483647, %v201_v1  ;;  %vm207_vm5 = vweird.f32 %v201_v1  ;;  %vm423_vm7 = vweird.f32 %v699_v23 }
  0xca   : > { %v314_v41 = vadd.f32 %v313_v8, %v312_v22  ;;  %v214_v56 = vor.u32 1.1754944e-38, %v213_v46  ;;  %v429_v59 = vand.u32 2147483648, %v699_v23  ;;  %v427_v61 = vand.u32 2147483647, %v699_v23 }
  0xcb   : > { %v355_v26 = vpop.xlane.xlu1 %354  ;;  %vm212_vm10 = vcmp.eq.f32.partialorder %v211_v49, 8.507059e+37  ;;  %v331_v2 = vor.u32 1.1754944e-38, %v330_v53  ;;  %vm329_vm12 = vcmp.eq.f32.partialorder %v328_v52, 8.507059e+37 }
  0xcc   : > { %v572_v27 = vpop.eup %571  ;;  %v356_v28 = vrot.slane %v355_v26, 4  ;;  %v315_v51 = vrot.slane %v314_v41, 1  ;;  %v430_v0 = vor.u32 1.1754944e-38, %v429_v59  ;;  %vm428_vm13 = vcmp.eq.f32.partialorder %v427_v61, 8.507059e+37 }
  0xcd   : > { %v320_v31 = vmul.f32 %v572_v27, %v696_v20  ;;  %vm325_vm3 = vweird.f32 %v572_v27 }
  0xce   : > { %v574_v32 = vpop.eup %573  ;;  %v357_v33 = vadd.f32 %v356_v28, %v355_v26  ;;  %vm712_vm6 = vmor %vm324_vm0, %vm325_vm3  ;;  %v316_v63 = vadd.f32 %v315_v51, %v314_v41  ;;  %vm448_vm0 = vcmask 57344  }
  0xcf   : > { %v576_v34 = vpop.eup %575  ;;  %v203_v35 = vmul.f32 %v574_v32, %v201_v1  ;;  %v321_v37 = vsub.f32 1.0, %v320_v31  ;;  %vm208_vm4 = vweird.f32 %v574_v32 }
  0xd0   : > { %v419_v39 = vmul.f32 %v576_v34, %v699_v23  ;;  %v358_v40 = vrot.slane %v357_v33, 2  ;;  %vm424_vm8 = vweird.f32 %v576_v34  ;;  %vm209_vm9 = vmor %vm207_vm5, %vm208_vm4 }
  0xd1   : > { %v204_v43 = vsub.f32 1.0, %v203_v35  ;;  %v322_v44 = vmul.f32 %v572_v27, %v321_v37  ;;  %vm425_vm11 = vmor %vm423_vm7, %vm424_vm8 }
  0xd2   : > { %v359_v45 = vadd.f32 %v358_v40, %v357_v33  ;;  %v420_v36 = vsub.f32 1.0, %v419_v39 }
  0xd3   : > { %v205_v48 = vmul.f32 %v574_v32, %v204_v43  ;;  %v323_v50 = vadd.f32 %v572_v27, %v322_v44 }
  0xd4   : > { %v421_v54 = vmul.f32 %v576_v34, %v420_v36  ;;  %v360_v57 = vrot.slane %v359_v45, 1 }
  0xd5   : > { %v206_v47 = vadd.f32 %v574_v32, %v205_v48  ;;  %v327_v60 = vsel %vm712_vm6, %v572_v27, %v323_v50 }
  0xd6   : > { %v422_v58 = vadd.f32 %v576_v34, %v421_v54  ;;  %v332_v5 = vsel %vm329_vm12, %v331_v2, %v327_v60  ;;  %v361_v6 = vadd.f32 %v360_v57, %v359_v45  ;;  %s526_s23 = spop %525 }
  0xd7   : > { %v210_v29 = vsel %vm209_vm9, %v574_v32, %v206_v47 }
  0xd8   : > { %v215_v62 = vsel %vm212_vm10, %v214_v56, %v210_v29  ;;  %v426_v4 = vsel %vm425_vm11, %v576_v34, %v422_v58 }
  0xd9   : > { %527 = vpush %v215_v62  ;;  %v431_v11 = vsel %vm428_vm13, %v430_v0, %v426_v4 }
  0xda   : > { %529 = vpush %v316_v63 }
  0xdb   : > { %531 = vpush %v332_v5 }
  0xdc   : > { %533 = vpush %v361_v6 }
  0xdd   : > { %535 = vpush %v369_v7 }
  0xde   : > { %537 = vpush %v414_v10 }
  0xdf   : > { %539 = vpush %v431_v11 }
 0x10a   : > { %s528_s24 = spop %527 }
 0x10b   : > { %s217_s25 = smul.f32 %s528_s24, %s526_s23  ;;  %s530_s26 = spop %529 }
 0x10c   : > { %s532_s27 = spop %531 }
 0x10d   : > { %s752_s25 = smov (!%p178_p4, %s217_s25), 0.0  ;;  %s334_s28 = smul.f32 %s532_s27, %s530_s26 }
 0x10e   : > { %s534_s29 = spop %533  ;;  %v438_v9 = vstv %s752_s25 }
 0x10f   : > { %s536_s30 = spop %535  ;;  %v439_v14 = vsel %vm437_vm14, %v438_v9, 0.0 }
 0x110   : > { %s371_s3 = smul.f32 %s536_s30, %s534_s29  ;;  %s538_s4 = spop %537 }
 0x111   : > { %s540_s5 = spop %539 }
 0x112   : > { %s754_s28 = smov (!%p178_p4, %s334_s28), %s371_s3  ;;  %s433_s6 = smul.f32 %s540_s5, %s538_s4 }
 0x113   : > { %v441_v15 = vstv %s754_s28 }
 0x114   : > { %v442_v16 = vsel %vm440_vm15, %v441_v15, 0.0  ;;  %s756_s6 = smov (!%p178_p4, %s433_s6), 0.0 }
 0x115   : > { %v443_v17 = vadd.f32 %v442_v16, %v439_v14  ;;  %v445_v18 = vstv %s756_s6 }
 0x116   : > { %v446_v19 = vsel %vm444_vm1, %v445_v18, 0.0 }
 0x117   : > { %v447_v20 = vadd.f32 %v446_v19, %v443_v17 }
 0x119   : > { %449 = vst.msk [vmem:[%s159_s11] sm:$0x1] %vm448_vm0, %v447_v20 }
 0x11a PF: > { %s12_s9 = sadd.s32 1, %s583_s9  }
 0x11b   : > { %p9_p5 = scmp.ge.s32.totalorder %s12_s9, 4  }
 0x11d   :  { %11 = sbr.rel (!%p9_p5) target bundleno = 1 (0x1), region = 61 }

</bundles_post_ra>
